<compile_context>
chip_gen: v7x
topology: tpu7x:2x2x1
jax: 0.10.0
libtpu: 0.0.40
codegen_flags: <defaults>
</compile_context>

<pallas_src>
import functools
import math

import jax
import jax.numpy as jnp
from jax import lax
from jax.experimental import pallas as pl
from jax.experimental.pallas import tpu as pltpu


def _senet_kernel(x_ref, w_sq_ref, w_ex_ref, o_ref, *, unroll):
    # x_ref:    (TB, C, TL)  current (batch-tile, seq-tile) block, layout (C, L)
    # w_sq_ref: (H, C)       squeeze Linear weight (out=H, in=C), resident
    # w_ex_ref: (C, H)       excitation Linear weight (out=C, in=H), resident
    # o_ref:    (TB, C, TL)
    w_sq = w_sq_ref[...]
    w_ex = w_ex_ref[...]
    tb = x_ref.shape[0]

    def body(i, carry):
        x = x_ref[i]                                                  # (C, TL)
        # squeeze: (H, C) @ (C, TL) -> (H, TL), f32 accumulation on the MXU
        h = jnp.dot(w_sq, x, preferred_element_type=jnp.float32)
        h = jnp.maximum(h, 0.0)                                       # ReLU (f32 VPU)
        # excitation: (C, H) @ (H, TL) -> (C, TL); MXU operands in streaming dtype
        g = jnp.dot(w_ex, h.astype(w_ex.dtype),
                    preferred_element_type=jnp.float32)
        g = jax.nn.sigmoid(g)                                         # f32 EUP
        # gating multiply in f32 (v5e has no bf16 VPU), cast on store
        o_ref[i] = (x.astype(jnp.float32) * g).astype(o_ref.dtype)
        return carry

    lax.fori_loop(0, tb, body, 0, unroll=unroll)


def _vmem_capacity_bytes():
    """Physical VMEM of the current TPU generation (conservative fallback)."""
    try:
        info = pltpu.get_tpu_info()
        cap = getattr(info, "vmem_capacity_bytes", None)
        if cap:
            return int(cap)
    except Exception:
        pass
    return 64 * 1024 * 1024   # v7x per-TC VMEM (smallest generation) as safe default


def _pick_tiles(B, C, L, itemsize, target_block_bytes):
    """Pick (TB, TL, n_b, n_l): block ~target_block_bytes, TL lane-dense (multiple
    of 128 or the full L), and >=4 grid steps kept when the problem size allows."""
    row_bytes = C * itemsize

    if L <= 256 or row_bytes * L <= target_block_bytes:
        TL = L                                              # full-extent block (always legal)
    else:
        TL = max(128, (target_block_bytes // row_bytes) // 128 * 128)
        TL = min(TL, (L // 128) * 128)
        # keep enough grid steps for dual-TC / megacore sharding
        while TL > 256 and B * pl.cdiv(L, TL) < 4:
            TL = max(128, (TL // 2) // 128 * 128)
    n_l = pl.cdiv(L, TL)

    TB = 1
    if n_l == 1:
        TB = min(B, max(1, target_block_bytes // max(row_bytes * TL, 1)))
        TB = min(TB, 512)                                   # bound in-kernel loop trip count
        while TB > 1 and pl.cdiv(B, TB) < min(4, B):
            TB = max(1, TB // 2)
    n_b = pl.cdiv(B, TB)
    return TB, TL, n_b, n_l


def senet_forward(x_ncl, w_sq, w_ex, *, target_block_bytes=None):
    """SE gating in native (B, C, L) layout.

    x_ncl: (B, C, L) f32 or bf16.  w_sq: (H, C).  w_ex: (C, H).
    Returns (B, C, L) in x_ncl.dtype; matmul accumulation / sigmoid / gating in f32.
    """
    B, C, L = x_ncl.shape
    H = w_sq.shape[0]
    assert w_sq.shape == (H, C) and w_ex.shape == (C, H)

    itemsize = jnp.dtype(x_ncl.dtype).itemsize
    vmem_cap = _vmem_capacity_bytes()
    if target_block_bytes is None:
        # ~2-6 MiB blocks; generation aware (v7x: 64 MiB -> ~4 MiB blocks).
        target_block_bytes = min(6 << 20, max(2 << 20, vmem_cap // 16))

    TB, TL, n_b, n_l = _pick_tiles(B, C, L, itemsize, target_block_bytes)

    block_bytes = TB * C * TL * itemsize
    weight_bytes = 2 * H * C * jnp.dtype(w_sq.dtype).itemsize
    # x-in + out double-buffered, weights double-buffered, plus slack.
    needed = 4 * block_bytes + 2 * weight_bytes + (2 << 20)
    vmem_limit = int(min(vmem_cap * 7 // 8, max(needed + needed // 2, 32 << 20)))

    cost = pl.CostEstimate(
        flops=4 * B * L * C * H,                            # two matmuls
        transcendentals=2 * B * L * C,                      # sigmoid ~ exp + reciprocal
        bytes_accessed=2 * B * C * L * itemsize + weight_bytes,
    )

    kernel = functools.partial(_senet_kernel, unroll=TB <= 8)

    out = pl.pallas_call(
        kernel,
        out_shape=jax.ShapeDtypeStruct((B, C, L), x_ncl.dtype),
        grid_spec=pltpu.PrefetchScalarGridSpec(
            num_scalar_prefetch=0,
            grid=(n_b, n_l),
            in_specs=[
                pl.BlockSpec((TB, C, TL), lambda b, l: (b, 0, l)),
                pl.BlockSpec((H, C), lambda b, l: (0, 0)),   # resident weights
                pl.BlockSpec((C, H), lambda b, l: (0, 0)),
            ],
            out_specs=pl.BlockSpec((TB, C, TL), lambda b, l: (b, 0, l)),
        ),
        compiler_params=pltpu.CompilerParams(
            dimension_semantics=("parallel", "parallel"),
            vmem_limit_bytes=vmem_limit,
        ),
        cost_estimate=cost,
    )(x_ncl, w_sq, w_ex)

    return out


def _reference(x_ncl, w_sq, w_ex):
    # Pure-JAX reference mirroring the PyTorch module exactly (in f32).
    x = jnp.transpose(x_ncl, (0, 2, 1)).astype(jnp.float32)          # (B, L, C)
    g = jnp.maximum(x @ w_sq.astype(jnp.float32).T, 0.0)
    g = jax.nn.sigmoid(g @ w_ex.astype(jnp.float32).T)
    return jnp.transpose(x * g, (0, 2, 1))


if __name__ == "__main__":
    # Small shapes: batch=2, channels=32 (ratio=8 -> hidden=4), seq=256.
    B, C, L, ratio = 2, 32, 256, 8
    H = C // ratio

    key = jax.random.PRNGKey(0)
    kx, kx2, k1, k2 = jax.random.split(key, 4)

    x = jax.random.normal(kx, (B, C, L), dtype=jnp.float32)
    bound_sq = 1.0 / math.sqrt(C)
    bound_ex = 1.0 / math.sqrt(H)
    w_sq = jax.random.uniform(k1, (H, C), jnp.float32, -bound_sq, bound_sq)
    w_ex = jax.random.uniform(k2, (C, H), jnp.float32, -bound_ex, bound_ex)

    ref = _reference(x, w_sq, w_ex)

    # 1) f32 path, auto tiling (bit-tight against the reference).
    out = jax.block_until_ready(senet_forward(x, w_sq, w_ex))
    assert out.shape == (B, C, L)
    assert jnp.allclose(out, ref, atol=1e-5, rtol=1e-5)

    # 2) bf16 streaming path (halves HBM bytes on v6e/v7x); f32 accumulation inside.
    out_bf16 = jax.block_until_ready(
        senet_forward(x.astype(jnp.bfloat16),
                      w_sq.astype(jnp.bfloat16),
                      w_ex.astype(jnp.bfloat16)))
    assert out_bf16.dtype == jnp.bfloat16
    assert jnp.allclose(out_bf16.astype(jnp.float32), ref, atol=5e-2, rtol=5e-2)

    # 3) Multi-tile grid with a ragged (non-128-multiple) sequence: forces TL=128
    #    tiles, grid=cdiv, and a masked partial last tile.
    L2 = 600
    x2 = jax.random.normal(kx2, (B, C, L2), dtype=jnp.float32)
    out2 = jax.block_until_ready(
        senet_forward(x2, w_sq, w_ex, target_block_bytes=16 * 1024))
    assert jnp.allclose(out2, _reference(x2, w_sq, w_ex), atol=1e-5, rtol=1e-5)

    print("KERNEL_OK")
</pallas_src>

<mosaic_0001>
module attributes {stable_mosaic.version = 11 : i64} {
  func.func @_senet_kernel(%arg0: i32, %arg1: i32, %arg2: memref<1x32x256xf32, #tpu.memory_space<vmem>>, %arg3: memref<4x32xf32, #tpu.memory_space<vmem>>, %arg4: memref<32x4xf32, #tpu.memory_space<vmem>>, %arg5: memref<1x32x256xf32, #tpu.memory_space<vmem>>) attributes {dimension_semantics = [#tpu.dimension_semantics<parallel>, #tpu.dimension_semantics<parallel>], iteration_bounds = array<i64: 2, 1>, scalar_prefetch = 0 : i64, scratch_operands = 0 : i64, tpu.core_type = #tpu.core_type<tc>, window_params = [{transform_indices = @transform_0, window_bounds = array<i64: 1, 32, 256>}, {pipeline_mode = #tpu.pipeline_mode<synchronous>, transform_indices = @transform_1, window_bounds = array<i64: 4, 32>}, {pipeline_mode = #tpu.pipeline_mode<synchronous>, transform_indices = @transform_2, window_bounds = array<i64: 32, 4>}, {transform_indices = @transform_3, window_bounds = array<i64: 1, 32, 256>}]} {
    %c0 = arith.constant 0 : index
    %c0_0 = arith.constant 0 : index
    %0 = vector.load %arg3[%c0, %c0_0] : memref<4x32xf32, #tpu.memory_space<vmem>>, vector<4x32xf32>
    %c0_1 = arith.constant 0 : index
    %c0_2 = arith.constant 0 : index
    %1 = vector.load %arg4[%c0_1, %c0_2] : memref<32x4xf32, #tpu.memory_space<vmem>>, vector<32x4xf32>
    %c0_i32 = arith.constant 0 : i32
    %2 = arith.index_cast %c0_i32 : i32 to index
    %c0_3 = arith.constant 0 : index
    %c0_4 = arith.constant 0 : index
    %3 = vector.load %arg2[%2, %c0_3, %c0_4] : memref<1x32x256xf32, #tpu.memory_space<vmem>>, vector<1x32x256xf32>
    %4 = vector.shape_cast %3 : vector<1x32x256xf32> to vector<32x256xf32>
    %cst = arith.constant dense<0.000000e+00> : vector<4x256xf32>
    %5 = tpu.matmul %0, %4, %cst {dimension_numbers = #tpu.dot_dimension_numbers<[1], [0], [0], [1], [0, 0, 1, 1], [], []>} : vector<4x32xf32>, vector<32x256xf32>, vector<4x256xf32> -> vector<4x256xf32>
    %cst_5 = arith.constant 0.000000e+00 : f32
    %6 = vector.broadcast %cst_5 : f32 to vector<4x256xf32>
    %7 = arith.maximumf %5, %6 : vector<4x256xf32>
    %cst_6 = arith.constant dense<0.000000e+00> : vector<32x256xf32>
    %8 = tpu.matmul %1, %7, %cst_6 {dimension_numbers = #tpu.dot_dimension_numbers<[1], [0], [0], [1], [0, 0, 1, 1], [], []>} : vector<32x4xf32>, vector<4x256xf32>, vector<32x256xf32> -> vector<32x256xf32>
    %9 = arith.negf %8 : vector<32x256xf32>
    %10 = math.exp %9 : vector<32x256xf32>
    %cst_7 = arith.constant 1.000000e+00 : f32
    %11 = vector.broadcast %cst_7 : f32 to vector<32x256xf32>
    %12 = arith.addf %11, %10 : vector<32x256xf32>
    %13 = arith.divf %11, %12 : vector<32x256xf32>
    %14 = arith.mulf %4, %13 : vector<32x256xf32>
    %15 = arith.index_cast %c0_i32 : i32 to index
    %c0_8 = arith.constant 0 : index
    %c0_9 = arith.constant 0 : index
    %16 = vector.load %arg5[%15, %c0_8, %c0_9] : memref<1x32x256xf32, #tpu.memory_space<vmem>>, vector<1x32x256xf32>
    %17 = vector.shape_cast %16 : vector<1x32x256xf32> to vector<32x256xf32>
    %18 = vector.shape_cast %14 : vector<32x256xf32> to vector<1x32x256xf32>
    tpu.vector_store %arg5[%15, %c0_8, %c0_9], %18 {strides = array<i32>} : memref<1x32x256xf32, #tpu.memory_space<vmem>>, vector<1x32x256xf32>,
    %c1_i32 = arith.constant 1 : i32
    return
  }
  func.func @transform_0(%arg0: i32, %arg1: i32) -> (i32, i32, i32) {
    %c0_i32 = arith.constant 0 : i32
    %c0_i32_0 = arith.constant 0 : i32
    return %arg0, %c0_i32, %arg1 : i32, i32, i32
  }
  func.func @transform_1(%arg0: i32, %arg1: i32) -> (i32, i32) {
    %c0_i32 = arith.constant 0 : i32
    %c0_i32_0 = arith.constant 0 : i32
    %c0_i32_1 = arith.constant 0 : i32
    return %c0_i32, %c0_i32_0 : i32, i32
  }
  func.func @transform_2(%arg0: i32, %arg1: i32) -> (i32, i32) {
    %c0_i32 = arith.constant 0 : i32
    %c0_i32_0 = arith.constant 0 : i32
    %c0_i32_1 = arith.constant 0 : i32
    return %c0_i32, %c0_i32_0 : i32, i32
  }
  func.func @transform_3(%arg0: i32, %arg1: i32) -> (i32, i32, i32) {
    %c0_i32 = arith.constant 0 : i32
    %c0_i32_0 = arith.constant 0 : i32
    return %arg0, %c0_i32, %arg1 : i32, i32, i32
  }
}

</mosaic_0001>

<bundles_post_ra>
// kernel: tpu_custom_call.1
= control target key start
LH: loop header
LB: loop body
LE: loop exit
PB: predicated region body
PF: predicated region fallthrough
CT: control target
= control target key end

     0   :  { %8 = vsyncpa [#allocation3], 0  ;;  %s1081_s0 = inlined_call_operand.hbm [shape: f32[2,32,256], index: 0, kind: input, shape index: {}]   ;;  %s1082_s1 = inlined_call_operand.vmem [shape: f32[4,32], index: 1, kind: input, shape index: {}]   ;;  %s1083_s2 = inlined_call_operand.vmem [shape: f32[32,4], index: 2, kind: input, shape index: {}]   ;;  %s1084_s3 = inlined_call_operand.hbm [shape: f32[2,32,256], index: 3, kind: output, shape index: {}]  }
   0x1   :  { %10 = vsyncpa [#allocation3 + $0x1], 0 }
   0x2   :  { %11 = vsyncpa [#allocation4], 0 }
   0x3   :  { %13 = vsyncpa [#allocation4 + $0x1], 0  ;;  %s855_s12 = smov 0   ;;  %s857_s13 = smov 0  }
   0x4   :  { %s859_s14 = smov 0   ;;  %s861_s15 = smov 0  }
   0x5   :  { %s863_s16 = smov 0   ;;  %s865_s17 = smov 0  }
   0x6 LB: > { %s575_s18 = sadd.s32 4294967295, %s826_s17   ;;  %s576_s19 = sadd.s32 4294967294, %s826_s17   ;;  %s826_s17 = sphi %s865_s17, %s19_s17   ;;  %s822_s16 = sphi %s863_s16, %s1099_s16   ;;  %s818_s15 = sphi %s861_s15, %s1098_s15   ;;  %s814_s14 = sphi %s859_s14, %s1097_s14   ;;  %s810_s13 = sphi %s857_s13, %s1096_s13   ;;  %s806_s12 = sphi %s855_s12, %s1095_s12  }
   0x7   : > { %s31_s20 = sadd.s32 1, %s822_s16  ;;  %s40_s21 = sadd.s32 1, %s814_s14 }
   0x8   : > { %p33_p0 = scmp.ge.s32.totalorder %s31_s20, 2  ;;  %p47_p1 = scmp.ne.s32.totalorder %s814_s14, %s810_s13 }
   0x9   : > { %p48_p2 = scmp.eq.s32.totalorder %s826_s17, 0  ;;  %p53_p3 = scmp.ne.s32.totalorder %s810_s13, %s806_s12 }
   0xa   : > { %s1101_s20 = smov (%p33_p0, %s31_s20), 0  ;;  %p54_p5 = scmp.eq.s32.totalorder %s575_s18, 0 }
   0xb   : > { %p896_p4 = por %p48_p2, %p47_p1  ;;  %s35_s23 = ssub.s32 %s822_s16, %s1101_s20 }
   0xc   : > { %p121_p6 = scmp.eq.s32.totalorder %s575_s18, 1  ;;  %p38_p7 = scmp.eq.s32.totalorder %s35_s23, 0 }
   0xd   : > { %p902_p8 = por %p54_p5, %p53_p3  ;;  %p127_p10 = scmp.eq.s32.totalorder %s576_s19, 1 }
   0xe   : > { %p906_p9 = por %p121_p6, %p47_p1  ;;  %p627_p13 = scmp.lt.s32.totalorder %s826_s17, 2 }
   0xf   : > { %s911_s26 = scalar_select %p38_p7, %s814_s14, %s40_s21  }
  0x10   : > { %s1088_s25 = scalar_select %p906_p9, 1, 0 }
  0x11   : > { %p913_p11 = por %p127_p10, %p53_p3  ;;  %s153_s28 = sand.u32 1, %s814_s14  }
  0x12   : > { %s579_s29 = sshll.u32 %s153_s28, 6  ;;  %s605_s30 = sshll.u32 %s822_s16, 10 }
  0x13   : > { %s1089_s27 = scalar_select %p913_p11, 1, 0 }
  0x14   : > { %s924_s6 = scalar_lea.hbm %s1081_s0, %s605_s30  ;;  %s157_s7 = scalar_lea.vmem [#allocation2], %s579_s29 }
  0x15   : > { %s166_s8 = sshll.u32 %s157_s7, 4  ;;  %p930_p0 = pnand %p627_p13, %p896_p4  ;;  %s926_s8 = int_to_ptr.vmem [resolvable:$true] %s166_s8 }
  0x16   : > { %s935_s10 = scalar_lea.sflag [#allocation3], %s153_s28  ;;  %s714_s11 = scalar_lea.hbm %s924_s6, 1024 }
  0x17   : > { %p715_p2 = scmp.ne.s32.totalorder %s924_s6, %s714_s11  ;;  %p716_p3 = pneg %p930_p0 }
  0x18   : > { %s719_s21 = scalar_lea.hbm %s1081_s0, 2048  ;;  %p720_p4 = scmp.lt.u32.totalorder %s924_s6, %s1081_s0 }
  0x19   : > { %p717_p5 = pnand %p716_p3, %p715_p2  ;;  %p721_p7 = scmp.lt.u32.totalorder %s719_s21, %s714_s11 }
  0x1a   : > { %p723_p13 = scmp.lt.u32.totalorder %s714_s11, %s924_s6 }
  0x1b   : > { %p718_p6 = pneg %p717_p5  ;;  %p722_p10 = por %p721_p7, %p720_p4 }
  0x1d   : > { %p724_p12 = por %p723_p13, %p722_p10 }
  0x1f   : > { %p725_p1 = pnand %p724_p12, %p718_p6 }
  0x21   : > { %728 = shalt.err (!%p725_p1)
}
  0x22   : > { %s729_s28 = scalar_lea.vmem %s926_s8, 1024  ;;  %s828_s29 = smov [#allocation2]  }
  0x23   : > { %p730_p2 = scmp.ne.s32.totalorder %s926_s8, %s729_s28  ;;  %s734_s30 = sshll.u32 %s828_s29, 4  ;;  %s735_s30 = int_to_ptr.vmem [resolvable:$false] %s734_s30 }
  0x24   : > { %s736_s4 = scalar_lea.vmem %s735_s30, 2048  ;;  %p737_p9 = scmp.lt.s32.totalorder %s926_s8, %s735_s30 }
  0x25   : > { %p732_p5 = pnand %p730_p2, %p716_p3  ;;  %p738_p4 = scmp.lt.s32.totalorder %s736_s4, %s729_s28 }
  0x27   : > { %p733_p11 = pneg %p732_p5  ;;  %p739_p7 = por %p738_p4, %p737_p9 }
  0x29   : > { %p740_p10 = pnand %p739_p7, %p733_p11 }
  0x2b   : > { %743 = shalt.err (!%p740_p10)
}
  0x2c   : > { %s829_s5 = smov 256   ;;  %s830_s7 = smov 16  }
  0x2d   : > { %622 = dma.hbm_to_vmem [thread:$0]  (!%p930_p0), %s924_s6, 1024, %s926_s8, %s935_s10, %s829_s5, %s829_s5, %s830_s7  }
  0x2e   : > { %p174_p12 = scmp.lt.s32.totalorder %s826_s17, 3  ;;  %p1091_p1 = scmp.ge.s32.totalorder %s826_s17, 1 }
  0x30   : > { %p175_p3 = pnand %p1091_p1, %p174_p12 }
  0x31   : > { %s967_s11 = sand.u32 (!%p175_p3), 1, %s810_s13  }
  0x32   : > { %178 = sbr.rel (%p175_p3) target bundleno = 556 (0x22c), region = 32  ;;  %s583_s18 = sshll.u32 (!%p175_p3), %s967_s11, 6 }
  0x33   : > { %s181_s19 = scalar_lea.sflag (!%p175_p3), [#allocation3], %s967_s11  ;;  %s184_s21 = scalar_lea.vmem (!%p175_p3), [#allocation2], %s583_s18 }
  0x39   : > { %797 = dma.done.wait (%p902_p8), %s181_s19, 1024  }
  0x3a   : > { %799 = vsyncadd (%p902_p8), %s181_s19, 4294966272  ;;  %v831_v0 = vmov 0.0   ;;  %v977_v1 = vld [vmem:[%s184_s21 + $0x8] sm:$0xff]  ;;  %v979_v2 = vld [vmem:[%s184_s21 + $0x18] sm:$0xff]  ;;  %vm222_vm0 = vcmask 261120   ;;  %vm312_vm1 = vcmask 1043456  }
  0x3b   : > { %290 = vmatprep.mubr.f32.mxu0 %v831_v0  ;;  %383 = vmatprep.mubr.f32.mxu1 %v831_v0  ;;  %v981_v3 = vld [vmem:[%s184_s21] sm:$0xff]  ;;  %v607_v4 = vpack.c.bf16 %v979_v2, %v977_v1  ;;  %v985_v5 = vld [vmem:[%s184_s21 + $0x10] sm:$0xff]  ;;  %v987_v6 = vld [vmem:[%s184_s21 + $0x28] sm:$0xff]  ;;  %vm299_vm2 = vcmask 31744   ;;  %s206_s4 = scalar_lea.vmem [#allocation5], %s583_s18  ;;  %s606_s5 = sshll.u32 %s818_s15, 10 }
  0x3c   : > { %v989_v7 = vld [vmem:[%s184_s21 + $0x38] sm:$0xff]  ;;  %v609_v8 = vpack.c.bf16 %v985_v5, %v981_v3  ;;  %v995_v10 = vld [vmem:[%s184_s21 + $0x20] sm:$0xff]  ;;  %v997_v11 = vld [vmem:[%s184_s21 + $0x30] sm:$0xff]  ;;  %s488_s7 = sshll.u32 %s206_s4, 4  ;;  %s1029_s21 = scalar_lea.hbm %s1084_s3, %s606_s5  ;;  %s1031_s7 = int_to_ptr.vmem [resolvable:$true] %s488_s7 }
  0x3d   : > { %v611_v9 = vpack.c.bf16 %v989_v7, %v987_v6  ;;  %608 = vmatprep.subr.bf16.mxu0 %v607_v4  ;;  %v613_v12 = vpack.c.bf16 %v997_v11, %v995_v10  ;;  %v209_v13 = vld [vmem:[%s1082_s1] sm:$0xf]  ;;  %v211_v19 = vld [vmem:[%s1083_s2 + $0x8] sm:$0xff]  ;;  %v212_v20 = vld [vmem:[%s1083_s2 + $0x10] sm:$0xff]  ;;  %s473_s24 = scalar_lea.sflag [#allocation4], %s967_s11  ;;  %s744_s15 = scalar_lea.vmem %s1031_s7, 1024 }
  0x3e   : > { %610 = vmatpush1.bf16.msra.mxu0 %v609_v8  ;;  %v210_v18 = vld [vmem:[%s1083_s2] sm:$0xff]  ;;  %v213_v21 = vld [vmem:[%s1083_s2 + $0x18] sm:$0xff]  ;;  %p745_p8 = scmp.ne.s32.totalorder %s1031_s7, %s744_s15  ;;  %p1092_p9 = scmp.ne.s32.totalorder %s1088_s25, 0 }
  0x3f   : > { %612 = vmatprep.subr.bf16.mxu0 %v611_v9  ;;  %s832_s6 = smov [#allocation5]  }
  0x40   : > { %p746_p11 = pnand %p745_p8, %p1092_p9  ;;  %s748_s8 = sshll.u32 %s832_s6, 4  ;;  %s749_s8 = int_to_ptr.vmem [resolvable:$false] %s748_s8 }
  0x41   : > { %s750_s9 = scalar_lea.vmem %s749_s8, 2048  ;;  %p751_p6 = scmp.lt.s32.totalorder %s1031_s7, %s749_s8 }
  0x42   : > { %614 = vmatpush1.bf16.msra.mxu0 %v613_v12  ;;  %p747_p0 = pneg %p746_p11  ;;  %p752_p13 = scmp.lt.s32.totalorder %s750_s9, %s744_s15 }
  0x44   : > { %p753_p2 = por %p752_p13, %p751_p6 }
  0x45   : > { %585 = vmatmul.mubr.msk.f32.vlgmr.msra.gmra.mrb[0].mxu0 %vm222_vm0, %v209_v13 }
  0x46   : > { %p754_p5 = pnand %p753_p2, %p747_p0 }
 0x118   : > { %v292_v14 = vpop.f32.mrb[0].mxu0 }
 0x119   : > { %v294_v15 = vpop.f32.mrb[1].mxu0  ;;  %v297_v17 = vmax.f32 %v292_v14, 0.0 }
 0x11a   : > { %v298_v16 = vmax.f32 %v294_v15, 0.0 }
 0x11c   : > { %586 = vmatprep.subr.msk.mxu1 %vm312_vm1, %v298_v16 }
 0x11d   : > { %587 = vmatpush1.msk.msra.mxu1 %vm312_vm1, %v297_v17 }
 0x11e   : > { %588 = vmatmul.mubr.msk.f32.vlgmr.msra.gmra.mrb[0].mxu1 %vm299_vm2, %v210_v18 }
 0x11f   : > { %389 = vmatprep.mubr.f32.mxu1 %v831_v0 }
 0x122   : > { %589 = vmatmul.mubr.msk.f32.gmra.mrb[2].mxu1 %vm299_vm2, %v211_v19 }
 0x123   : > { %395 = vmatprep.mubr.f32.mxu1 %v831_v0 }
 0x126   : > { %590 = vmatmul.mubr.msk.f32.gmra.mrb[4].mxu1 %vm299_vm2, %v212_v20 }
 0x127   : > { %401 = vmatprep.mubr.f32.mxu1 %v831_v0 }
 0x12a   : > { %591 = vmatmul.mubr.msk.f32.gmra.mrb[6].mxu1 %vm299_vm2, %v213_v21 }
 0x1f1   : > { %v385_v22 = vpop.f32.mrb[0].mxu1 }
 0x1f2   : > { %v592_v23 = vmul.f32 -1.442695, %v385_v22  ;;  %v387_v24 = vpop.f32.mrb[1].mxu1 }
 0x1f3   : > { %v593_v25 = vmul.f32 -1.442695, %v387_v24 }
 0x1f4   : > { %682 = vpow2.f32 %v592_v23 }
 0x1f5   : > { %684 = vpow2.f32 %v593_v25  ;;  %v391_v26 = vpop.f32.mrb[2].mxu1 }
 0x1f6   : > { %v594_v27 = vmul.f32 -1.442695, %v391_v26  ;;  %v393_v28 = vpop.f32.mrb[3].mxu1 }
 0x1f7   : > { %v595_v29 = vmul.f32 -1.442695, %v393_v28 }
 0x1f8   : > { %686 = vpow2.f32 %v594_v27 }
 0x1f9   : > { %688 = vpow2.f32 %v595_v29  ;;  %v397_v30 = vpop.f32.mrb[4].mxu1 }
 0x1fa   : > { %v596_v31 = vmul.f32 -1.442695, %v397_v30  ;;  %v399_v32 = vpop.f32.mrb[5].mxu1 }
 0x1fb   : > { %v597_v33 = vmul.f32 -1.442695, %v399_v32 }
 0x1fc   : > { %690 = vpow2.f32 %v596_v31 }
 0x1fd   : > { %692 = vpow2.f32 %v597_v33  ;;  %v403_v34 = vpop.f32.mrb[6].mxu1 }
 0x1fe   : > { %v683_v35 = vpop.eup %682  ;;  %v598_v36 = vmul.f32 -1.442695, %v403_v34  ;;  %v405_v37 = vpop.f32.mrb[7].mxu1 }
 0x1ff   : > { %v685_v38 = vpop.eup %684  ;;  %v432_v39 = vadd.f32 1.0, %v683_v35  ;;  %v599_v40 = vmul.f32 -1.442695, %v405_v37 }
 0x200   : > { %v433_v41 = vadd.f32 1.0, %v685_v38  ;;  %694 = vpow2.f32 %v598_v36 }
 0x201   : > { %696 = vrcp.f32 %v432_v39 }
 0x202   : > { %v687_v42 = vpop.eup %686  ;;  %698 = vrcp.f32 %v433_v41 }
 0x203   : > { %v689_v43 = vpop.eup %688  ;;  %v434_v44 = vadd.f32 1.0, %v687_v42  ;;  %700 = vpow2.f32 %v599_v40 }
 0x204   : > { %v435_v45 = vadd.f32 1.0, %v689_v43 }
 0x205   : > { %702 = vrcp.f32 %v434_v44 }
 0x206   : > { %v691_v46 = vpop.eup %690  ;;  %704 = vrcp.f32 %v435_v45 }
 0x207   : > { %v693_v47 = vpop.eup %692  ;;  %v436_v48 = vadd.f32 1.0, %v691_v46 }
 0x208   : > { %v437_v49 = vadd.f32 1.0, %v693_v47 }
 0x209   : > { %706 = vrcp.f32 %v436_v48 }
 0x20a   : > { %v695_v50 = vpop.eup %694  ;;  %708 = vrcp.f32 %v437_v49 }
 0x20b   : > { %v697_v51 = vpop.eup %696  ;;  %v438_v52 = vadd.f32 1.0, %v695_v50 }
 0x20c   : > { %v699_v53 = vpop.eup %698  ;;  %v456_v54 = vmul.f32 %v697_v51, %v981_v3 }
 0x20d   : > { %v701_v55 = vpop.eup %700  ;;  %v457_v56 = vmul.f32 %v699_v53, %v977_v1  ;;  %710 = vrcp.f32 %v438_v52 }
 0x20e   : > { %464 = vst [vmem:[%s206_s4] sm:$0xff] %v456_v54  ;;  %v439_v57 = vadd.f32 1.0, %v701_v55 }
 0x20f   : > { %v703_v58 = vpop.eup %702  ;;  %465 = vst [vmem:[%s206_s4 + $0x8] sm:$0xff] %v457_v56 }
 0x210   : > { %v705_v59 = vpop.eup %704  ;;  %v458_v60 = vmul.f32 %v703_v58, %v985_v5  ;;  %712 = vrcp.f32 %v439_v57 }
 0x211   : > { %v459_v61 = vmul.f32 %v705_v59, %v979_v2 }
 0x212   : > { %466 = vst [vmem:[%s206_s4 + $0x10] sm:$0xff] %v458_v60 }
 0x213   : > { %v707_v62 = vpop.eup %706  ;;  %467 = vst [vmem:[%s206_s4 + $0x18] sm:$0xff] %v459_v61 }
 0x214   : > { %v709_v63 = vpop.eup %708  ;;  %v460_v0 = vmul.f32 %v707_v62, %v995_v10 }
 0x215   : > { %v461_v1 = vmul.f32 %v709_v63, %v987_v6 }
 0x216   : > { %468 = vst [vmem:[%s206_s4 + $0x20] sm:$0xff] %v460_v0 }
 0x217   : > { %v711_v3 = vpop.eup %710  ;;  %469 = vst [vmem:[%s206_s4 + $0x28] sm:$0xff] %v461_v1 }
 0x218   : > { %v462_v4 = vmul.f32 %v711_v3, %v997_v11 }
 0x21a   : > { %v713_v5 = vpop.eup %712  ;;  %470 = vst [vmem:[%s206_s4 + $0x30] sm:$0xff] %v462_v4 }
 0x21b   : > { %v463_v2 = vmul.f32 %v713_v5, %v989_v7 }
 0x21d   : > { %471 = vst [vmem:[%s206_s4 + $0x38] sm:$0xff] %v463_v2 }
 0x21e   : > { %757 = shalt.err (!%p754_p5)
}
 0x21f   : > { %s758_s10 = scalar_lea.hbm %s1029_s21, 1024  ;;  %s762_s28 = scalar_lea.hbm %s1084_s3, 2048 }
 0x220   : > { %p759_p4 = scmp.ne.s32.totalorder %s1029_s21, %s758_s10  ;;  %p763_p12 = scmp.lt.u32.totalorder %s1029_s21, %s1084_s3 }
 0x221   : > { %p764_p1 = scmp.lt.u32.totalorder %s762_s28, %s758_s10  ;;  %p766_p8 = scmp.lt.u32.totalorder %s758_s10, %s1029_s21 }
 0x222   : > { %p760_p7 = pnand %p759_p4, %p1092_p9 }
 0x223   : > { %p765_p3 = por %p764_p1, %p763_p12 }
 0x224   : > { %p761_p10 = pneg %p760_p7 }
 0x225   : > { %p767_p11 = por %p766_p8, %p765_p3 }
 0x227   : > { %p768_p0 = pnand %p767_p11, %p761_p10 }
 0x229   : > { %771 = shalt.err (!%p768_p0)
}
 0x22a   : > { %s833_s4 = smov 256   ;;  %s834_s5 = smov 16  }
 0x22b   : > { %617 = dma.vmem_to_hbm [thread:$0]  (%p1092_p9), %s1031_s7, 1024, %s1029_s21, %s473_s24, %s833_s4, %s833_s4, %s834_s5  }
 0x22c PF: > { %s503_s18 = sand.u32 1, %s806_s12   ;;  %p1093_p6 = scmp.ne.s32.totalorder %s1089_s27, 0 }
 0x22d   : > { %p1094_p13 = scmp.ge.s32.totalorder %s826_s17, 2  ;;  %s504_s19 = scalar_lea.sflag [#allocation4], %s503_s18 }
 0x22f   : > { %p624_p2 = pnand %p1094_p13, %p1093_p6 }
 0x231   : > { %801 = dma.done.wait (!%p624_p2), %s504_s19, 1024  }
 0x232   : > { %803 = vsyncadd (!%p624_p2), %s504_s19, 4294966272  ;;  %s19_s17 = sadd.s32 1, %s826_s17   ;;  %s1095_s12 = smov %s810_s13 }
 0x233   : > { %p16_p5 = scmp.ge.s32.totalorder %s19_s17, 4   ;;  %s1096_s13 = smov %s814_s14 }
 0x234   : > { %s1097_s14 = smov %s911_s26  ;;  %s1098_s15 = smov %s822_s16 }
 0x235   : > { %s1099_s16 = smov %s1101_s20  ;;  %18 = sbr.rel (!%p16_p5) target bundleno = 6 (0x6), region = 77 }
 0x23c   :  { %509 = vsyncpa [#allocation3], 1 }
 0x23d   :  { %511 = vsyncpa [#allocation3 + $0x1], 1 }
 0x23e   :  { %512 = vsyncpa [#allocation4], 1 }
 0x23f   :  { %514 = vsyncpa [#allocation4 + $0x1], 1 }

</bundles_post_ra>
